<compile_context>
chip_gen: v7x
topology: tpu7x:2x2x1
jax: 0.10.0
libtpu: 0.0.40
codegen_flags: <defaults>
</compile_context>

<pallas_src>
import math

import jax
import jax.numpy as jnp
from jax import lax
from jax.experimental import pallas as pl
from jax.experimental.pallas import tpu as pltpu  # noqa: F401  (TPU backend)

# Small, self-consistent problem sizes.
D_MODEL = 32
NUM_HEADS = 4
HEAD_DIM = D_MODEL // NUM_HEADS
SEQ = 8
BATCH = 2
D_FF = 64          # FeedForwad exists in __init__ but is unused by forward.
LN_EPS = 1e-5


# ---------------------------------------------------------------------------
# Kernel: one invocation, no grid.  Processes the whole (B*S, D) activation
# slab; weights arrive as two packed arrays.
#   x_ref    : (B*S, D)        residual input (batch-major rows)
#   bias_ref : (B*S, B*S)      additive attention bias
#                              (0 if same batch & key not padded, else -1e30)
#   w_ref    : (4, D, D)       [Weff_q, Weff_k, Weff_v, Wout^T]
#   b_ref    : (6, D)          [beff_q, beff_k, beff_v, bout, ln_gamma, ln_beta]
#   o_ref    : (B*S, D)
# ---------------------------------------------------------------------------
def encoder_block_kernel(x_ref, bias_ref, w_ref, b_ref, o_ref):
    x = x_ref[...]                                   # (BS, D) f32
    bvec = b_ref[...]                                # (6, D)
    gamma = bvec[4:5]                                # (1, D)
    beta = bvec[5:6]                                 # (1, D)

    # --- LayerNorm over d_model (eps = 1e-5) ---
    mu = jnp.mean(x, axis=-1, keepdims=True)
    var = jnp.mean(jnp.square(x - mu), axis=-1, keepdims=True)
    z = (x - mu) * lax.rsqrt(var + LN_EPS) * gamma + beta

    # --- fused effective projections (outer w_q/k/v folded into in_proj) ---
    q = jnp.dot(z, w_ref[0], preferred_element_type=jnp.float32) + bvec[0:1]
    k = jnp.dot(z, w_ref[1], preferred_element_type=jnp.float32) + bvec[1:2]
    v = jnp.dot(z, w_ref[2], preferred_element_type=jnp.float32) + bvec[2:3]
    wo = w_ref[3]                                    # (D, D) = out_proj_w^T

    bias = bias_ref[...]                             # (BS, BS), precomputed
    scale = 1.0 / math.sqrt(HEAD_DIM)

    # Residual + out_proj bias folded into the accumulator.
    acc = x + bvec[3:4]                              # (BS, D)

    # Static-unrolled head loop; each iteration handles all batch rows at once
    # (cross-batch attention is killed by the block-diagonal bias).
    for h in range(NUM_HEADS):
        lo = h * HEAD_DIM
        qh = q[:, lo:lo + HEAD_DIM]                  # (BS, hd)
        kh = k[:, lo:lo + HEAD_DIM]
        vh = v[:, lo:lo + HEAD_DIM]

        s = lax.dot_general(qh * scale, kh, (((1,), (1,)), ((), ())),
                            preferred_element_type=jnp.float32)   # (BS, BS)
        s = s + bias

        m = jnp.max(s, axis=-1, keepdims=True)
        e = jnp.exp(s - m)
        denom = jnp.sum(e, axis=-1, keepdims=True)
        p = e * pl.reciprocal(denom, approx=True)                  # softmax
        oh = jnp.dot(p, vh, preferred_element_type=jnp.float32)    # (BS, hd)

        # out_proj applied per head and summed (== concat @ W_out^T)
        acc = acc + jnp.dot(oh, wo[lo:lo + HEAD_DIM, :],
                            preferred_element_type=jnp.float32)

    o_ref[...] = acc


# ---------------------------------------------------------------------------
# Wrapper: parameter folding / packing (pure glue) + gridless pallas_call.
# ---------------------------------------------------------------------------
def encoder_block(x_sbd, mask, params):
    S, B, D = x_sbd.shape
    assert D == D_MODEL and S == SEQ and B == BATCH

    # (S, B, D) -> batch-major (B*S, D) slab.
    x = jnp.transpose(x_sbd, (1, 0, 2)).reshape(B * S, D).astype(jnp.float32)

    # --- fold outer w_q/w_k/w_v into the MHA in_proj ---
    # y = (z @ Wo^T + bo) @ Wi^T + bi = z @ (Wo^T Wi^T) + (bo Wi^T + bi)
    w_in = params["in_proj_w"]                       # (3D, D), nn.Linear layout
    b_in = params["in_proj_b"]                       # (3D,)

    def eff(w_outer, b_outer, w_inner, b_inner):
        W = w_outer.T @ w_inner.T                    # (D, D)
        b = b_outer @ w_inner.T + b_inner            # (D,)
        return W, b

    Wq, bq = eff(params["wq"], params["bq"], w_in[0 * D:1 * D], b_in[0 * D:1 * D])
    Wk, bk = eff(params["wk"], params["bk"], w_in[1 * D:2 * D], b_in[1 * D:2 * D])
    Wv, bv = eff(params["wv"], params["bv"], w_in[2 * D:3 * D], b_in[2 * D:3 * D])
    Wo = params["out_proj_w"].T                      # (D, D)
    bo = params["out_proj_b"]                        # (D,)

    w_pack = jnp.stack([Wq, Wk, Wv, Wo]).astype(jnp.float32)           # (4, D, D)
    b_pack = jnp.stack([bq, bk, bv, bo,
                        params["ln_g"], params["ln_b"]]).astype(jnp.float32)  # (6, D)

    # --- combined additive attention bias: key padding + cross-batch blocking ---
    idx = jnp.arange(B * S)
    same_batch = (idx[:, None] // S) == (idx[None, :] // S)            # (BS, BS)
    col_pad = mask.reshape(B * S)                                      # batch-major keys
    bias = jnp.where(same_batch & ~col_pad[None, :],
                     jnp.float32(0.0), jnp.float32(-1e30))             # (BS, BS)

    out = pl.pallas_call(
        encoder_block_kernel,
        out_shape=jax.ShapeDtypeStruct((B * S, D), jnp.float32),
    )(x, bias, w_pack, b_pack)

    # (B*S, D) -> (S, B, D)
    return jnp.transpose(out.reshape(B, S, D), (1, 0, 2))


# ---------------------------------------------------------------------------
# Deterministic parameter init (shapes match the PyTorch module's __init__).
# ---------------------------------------------------------------------------
def init_params(key, d_model):
    ks = jax.random.split(key, 5)

    def linear(k, out_f, in_f):
        kw, kb = jax.random.split(k)
        bound = 1.0 / math.sqrt(in_f)
        w = jax.random.uniform(kw, (out_f, in_f), jnp.float32, -bound, bound)
        b = jax.random.uniform(kb, (out_f,), jnp.float32, -bound, bound)
        return w, b

    wq, bq = linear(ks[0], d_model, d_model)
    wk, bk = linear(ks[1], d_model, d_model)
    wv, bv = linear(ks[2], d_model, d_model)
    in_w, in_b = linear(ks[3], 3 * d_model, d_model)      # MHA in_proj
    out_w, out_b = linear(ks[4], d_model, d_model)        # MHA out_proj
    return dict(
        wq=wq, bq=bq, wk=wk, bk=bk, wv=wv, bv=bv,
        in_proj_w=in_w, in_proj_b=in_b,
        out_proj_w=out_w, out_proj_b=out_b,
        ln_g=jnp.ones((d_model,), jnp.float32),
        ln_b=jnp.zeros((d_model,), jnp.float32),
    )


# ---------------------------------------------------------------------------
# Pure-JAX reference (unfused math) for a sanity check.
# ---------------------------------------------------------------------------
def reference(x_sbd, mask, p):
    S, B, D = x_sbd.shape
    H, hd = NUM_HEADS, HEAD_DIM
    x = x_sbd
    mu = x.mean(-1, keepdims=True)
    var = ((x - mu) ** 2).mean(-1, keepdims=True)
    z = (x - mu) / jnp.sqrt(var + LN_EPS) * p["ln_g"] + p["ln_b"]
    q1 = z @ p["wq"].T + p["bq"]
    k1 = z @ p["wk"].T + p["bk"]
    v1 = z @ p["wv"].T + p["bv"]
    q = q1 @ p["in_proj_w"][:D].T + p["in_proj_b"][:D]
    k = k1 @ p["in_proj_w"][D:2 * D].T + p["in_proj_b"][D:2 * D]
    v = v1 @ p["in_proj_w"][2 * D:].T + p["in_proj_b"][2 * D:]

    def split(t):  # (S, B, D) -> (B, H, S, hd)
        return t.reshape(S, B, H, hd).transpose(1, 2, 0, 3)

    qh, kh, vh = split(q), split(k), split(v)
    scores = jnp.einsum("bhsd,bhtd->bhst", qh, kh) / math.sqrt(hd)
    scores = scores + jnp.where(mask, -1e30, 0.0)[:, None, None, :]
    pw = jax.nn.softmax(scores, axis=-1)
    o = jnp.einsum("bhst,bhtd->bhsd", pw, vh)
    o = o.transpose(2, 0, 1, 3).reshape(S, B, D)
    attn = o @ p["out_proj_w"].T + p["out_proj_b"]
    return x + attn


if __name__ == "__main__":
    key = jax.random.PRNGKey(0)
    kx, kp = jax.random.split(key)

    x = jax.random.normal(kx, (SEQ, BATCH, D_MODEL), jnp.float32)   # (S, B, D)
    # key_padding_mask: True = masked key position; row 0 masks its last two
    # keys, row 1 masks nothing.
    mask = jnp.zeros((BATCH, SEQ), dtype=bool).at[0, -2:].set(True)

    params = init_params(kp, D_MODEL)

    y = encoder_block(x, mask, params)
    y = jax.block_until_ready(y)

    y_ref = reference(x, mask, params)
    assert y.shape == (SEQ, BATCH, D_MODEL)
    assert jnp.allclose(y, y_ref, atol=1e-2, rtol=1e-2), (
        "mismatch vs reference: max abs err = %e"
        % float(jnp.max(jnp.abs(y - y_ref))))

    print("KERNEL_OK")
</pallas_src>

<mosaic_0001>
module attributes {stable_mosaic.version = 11 : i64} {
  func.func @encoder_block_kernel(%arg0: memref<16x32xf32, #tpu.memory_space<vmem>>, %arg1: memref<16x16xf32, #tpu.memory_space<vmem>>, %arg2: memref<4x32x32xf32, #tpu.memory_space<vmem>>, %arg3: memref<6x32xf32, #tpu.memory_space<vmem>>, %arg4: memref<16x32xf32, #tpu.memory_space<vmem>>) attributes {dimension_semantics = [], scalar_prefetch = 0 : i64, scratch_operands = 0 : i64, tpu.core_type = #tpu.core_type<tc>} {
    %c0 = arith.constant 0 : index
    %c0_0 = arith.constant 0 : index
    %0 = vector.load %arg0[%c0, %c0_0] : memref<16x32xf32, #tpu.memory_space<vmem>>, vector<16x32xf32>
    %c0_1 = arith.constant 0 : index
    %c0_2 = arith.constant 0 : index
    %1 = vector.load %arg3[%c0_1, %c0_2] : memref<6x32xf32, #tpu.memory_space<vmem>>, vector<6x32xf32>
    %2 = vector.extract_strided_slice %1 {offsets = [4, 0], sizes = [1, 32], strides = [1, 1]} : vector<6x32xf32> to vector<1x32xf32>
    %3 = vector.extract_strided_slice %1 {offsets = [5, 0], sizes = [1, 32], strides = [1, 1]} : vector<6x32xf32> to vector<1x32xf32>
    %cst = arith.constant dense<0.000000e+00> : vector<16xf32>
    %4 = vector.multi_reduction <add>, %0, %cst [1] : vector<16x32xf32> to vector<16xf32>
    %5 = vector.shape_cast %4 : vector<16xf32> to vector<16x1xf32>
    %cst_3 = arith.constant 3.200000e+01 : f32
    %6 = vector.broadcast %cst_3 : f32 to vector<16x1xf32>
    %7 = arith.divf %5, %6 : vector<16x1xf32>
    %8 = vector.broadcast %7 : vector<16x1xf32> to vector<16x32xf32>
    %9 = arith.subf %0, %8 : vector<16x32xf32>
    %10 = arith.mulf %9, %9 : vector<16x32xf32>
    %cst_4 = arith.constant dense<0.000000e+00> : vector<16xf32>
    %11 = vector.multi_reduction <add>, %10, %cst_4 [1] : vector<16x32xf32> to vector<16xf32>
    %12 = vector.shape_cast %11 : vector<16xf32> to vector<16x1xf32>
    %cst_5 = arith.constant 3.200000e+01 : f32
    %13 = vector.broadcast %cst_5 : f32 to vector<16x1xf32>
    %14 = arith.divf %12, %13 : vector<16x1xf32>
    %15 = vector.broadcast %7 : vector<16x1xf32> to vector<16x32xf32>
    %16 = arith.subf %0, %15 : vector<16x32xf32>
    %cst_6 = arith.constant 9.99999974E-6 : f32
    %17 = vector.broadcast %cst_6 : f32 to vector<16x1xf32>
    %18 = arith.addf %14, %17 : vector<16x1xf32>
    %19 = math.rsqrt %18 : vector<16x1xf32>
    %20 = vector.broadcast %19 : vector<16x1xf32> to vector<16x32xf32>
    %21 = arith.mulf %16, %20 : vector<16x32xf32>
    %22 = vector.broadcast %2 : vector<1x32xf32> to vector<16x32xf32>
    %23 = arith.mulf %21, %22 : vector<16x32xf32>
    %24 = vector.broadcast %3 : vector<1x32xf32> to vector<16x32xf32>
    %25 = arith.addf %23, %24 : vector<16x32xf32>
    %c0_7 = arith.constant 0 : index
    %c0_8 = arith.constant 0 : index
    %c0_9 = arith.constant 0 : index
    %26 = vector.load %arg2[%c0_7, %c0_8, %c0_9] : memref<4x32x32xf32, #tpu.memory_space<vmem>>, vector<1x32x32xf32>
    %27 = vector.shape_cast %26 : vector<1x32x32xf32> to vector<32x32xf32>
    %cst_10 = arith.constant dense<0.000000e+00> : vector<16x32xf32>
    %28 = tpu.matmul %25, %27, %cst_10 {dimension_numbers = #tpu.dot_dimension_numbers<[1], [0], [0], [1], [0, 0, 1, 1], [], []>} : vector<16x32xf32>, vector<32x32xf32>, vector<16x32xf32> -> vector<16x32xf32>
    %29 = vector.extract_strided_slice %1 {offsets = [0, 0], sizes = [1, 32], strides = [1, 1]} : vector<6x32xf32> to vector<1x32xf32>
    %30 = vector.broadcast %29 : vector<1x32xf32> to vector<16x32xf32>
    %31 = arith.addf %28, %30 : vector<16x32xf32>
    %c1 = arith.constant 1 : index
    %c0_11 = arith.constant 0 : index
    %c0_12 = arith.constant 0 : index
    %32 = vector.load %arg2[%c1, %c0_11, %c0_12] : memref<4x32x32xf32, #tpu.memory_space<vmem>>, vector<1x32x32xf32>
    %33 = vector.shape_cast %32 : vector<1x32x32xf32> to vector<32x32xf32>
    %cst_13 = arith.constant dense<0.000000e+00> : vector<16x32xf32>
    %34 = tpu.matmul %25, %33, %cst_13 {dimension_numbers = #tpu.dot_dimension_numbers<[1], [0], [0], [1], [0, 0, 1, 1], [], []>} : vector<16x32xf32>, vector<32x32xf32>, vector<16x32xf32> -> vector<16x32xf32>
    %35 = vector.extract_strided_slice %1 {offsets = [1, 0], sizes = [1, 32], strides = [1, 1]} : vector<6x32xf32> to vector<1x32xf32>
    %36 = vector.broadcast %35 : vector<1x32xf32> to vector<16x32xf32>
    %37 = arith.addf %34, %36 : vector<16x32xf32>
    %c2 = arith.constant 2 : index
    %c0_14 = arith.constant 0 : index
    %c0_15 = arith.constant 0 : index
    %38 = vector.load %arg2[%c2, %c0_14, %c0_15] : memref<4x32x32xf32, #tpu.memory_space<vmem>>, vector<1x32x32xf32>
    %39 = vector.shape_cast %38 : vector<1x32x32xf32> to vector<32x32xf32>
    %cst_16 = arith.constant dense<0.000000e+00> : vector<16x32xf32>
    %40 = tpu.matmul %25, %39, %cst_16 {dimension_numbers = #tpu.dot_dimension_numbers<[1], [0], [0], [1], [0, 0, 1, 1], [], []>} : vector<16x32xf32>, vector<32x32xf32>, vector<16x32xf32> -> vector<16x32xf32>
    %41 = vector.extract_strided_slice %1 {offsets = [2, 0], sizes = [1, 32], strides = [1, 1]} : vector<6x32xf32> to vector<1x32xf32>
    %42 = vector.broadcast %41 : vector<1x32xf32> to vector<16x32xf32>
    %43 = arith.addf %40, %42 : vector<16x32xf32>
    %c3 = arith.constant 3 : index
    %c0_17 = arith.constant 0 : index
    %c0_18 = arith.constant 0 : index
    %44 = vector.load %arg2[%c3, %c0_17, %c0_18] : memref<4x32x32xf32, #tpu.memory_space<vmem>>, vector<1x32x32xf32>
    %45 = vector.shape_cast %44 : vector<1x32x32xf32> to vector<32x32xf32>
    %c0_19 = arith.constant 0 : index
    %c0_20 = arith.constant 0 : index
    %46 = vector.load %arg1[%c0_19, %c0_20] : memref<16x16xf32, #tpu.memory_space<vmem>>, vector<16x16xf32>
    %47 = vector.extract_strided_slice %1 {offsets = [3, 0], sizes = [1, 32], strides = [1, 1]} : vector<6x32xf32> to vector<1x32xf32>
    %48 = vector.broadcast %47 : vector<1x32xf32> to vector<16x32xf32>
    %49 = arith.addf %0, %48 : vector<16x32xf32>
    %50 = vector.extract_strided_slice %31 {offsets = [0, 0], sizes = [16, 8], strides = [1, 1]} : vector<16x32xf32> to vector<16x8xf32>
    %51 = vector.extract_strided_slice %37 {offsets = [0, 0], sizes = [16, 8], strides = [1, 1]} : vector<16x32xf32> to vector<16x8xf32>
    %52 = vector.extract_strided_slice %43 {offsets = [0, 0], sizes = [16, 8], strides = [1, 1]} : vector<16x32xf32> to vector<16x8xf32>
    %cst_21 = arith.constant 0.353553385 : f32
    %53 = vector.broadcast %cst_21 : f32 to vector<16x8xf32>
    %54 = arith.mulf %50, %53 : vector<16x8xf32>
    %cst_22 = arith.constant dense<0.000000e+00> : vector<16x16xf32>
    %55 = tpu.matmul %54, %51, %cst_22 {dimension_numbers = #tpu.dot_dimension_numbers<[1], [1], [0], [0], [0, 0, 1, 0], [], []>} : vector<16x8xf32>, vector<16x8xf32>, vector<16x16xf32> -> vector<16x16xf32>
    %56 = arith.addf %55, %46 : vector<16x16xf32>
    %cst_23 = arith.constant dense<0xFF800000> : vector<16xf32>
    %57 = vector.multi_reduction <maximumf>, %56, %cst_23 [1] : vector<16x16xf32> to vector<16xf32>
    %58 = vector.shape_cast %57 : vector<16xf32> to vector<16x1xf32>
    %59 = vector.broadcast %58 : vector<16x1xf32> to vector<16x16xf32>
    %60 = arith.subf %56, %59 : vector<16x16xf32>
    %61 = math.exp %60 : vector<16x16xf32>
    %cst_24 = arith.constant dense<0.000000e+00> : vector<16xf32>
    %62 = vector.multi_reduction <add>, %61, %cst_24 [1] : vector<16x16xf32> to vector<16xf32>
    %63 = vector.shape_cast %62 : vector<16xf32> to vector<16x1xf32>
    %64 = tpu.reciprocal %63 {approx = true} : vector<16x1xf32> -> vector<16x1xf32>
    %65 = vector.broadcast %64 : vector<16x1xf32> to vector<16x16xf32>
    %66 = arith.mulf %61, %65 : vector<16x16xf32>
    %cst_25 = arith.constant dense<0.000000e+00> : vector<16x8xf32>
    %67 = tpu.matmul %66, %52, %cst_25 {dimension_numbers = #tpu.dot_dimension_numbers<[1], [0], [0], [1], [0, 0, 1, 1], [], []>} : vector<16x16xf32>, vector<16x8xf32>, vector<16x8xf32> -> vector<16x8xf32>
    %68 = vector.extract_strided_slice %45 {offsets = [0, 0], sizes = [8, 32], strides = [1, 1]} : vector<32x32xf32> to vector<8x32xf32>
    %cst_26 = arith.constant dense<0.000000e+00> : vector<16x32xf32>
    %69 = tpu.matmul %67, %68, %cst_26 {dimension_numbers = #tpu.dot_dimension_numbers<[1], [0], [0], [1], [0, 0, 1, 1], [], []>} : vector<16x8xf32>, vector<8x32xf32>, vector<16x32xf32> -> vector<16x32xf32>
    %70 = arith.addf %49, %69 : vector<16x32xf32>
    %71 = vector.extract_strided_slice %31 {offsets = [0, 8], sizes = [16, 8], strides = [1, 1]} : vector<16x32xf32> to vector<16x8xf32>
    %72 = vector.extract_strided_slice %37 {offsets = [0, 8], sizes = [16, 8], strides = [1, 1]} : vector<16x32xf32> to vector<16x8xf32>
    %73 = vector.extract_strided_slice %43 {offsets = [0, 8], sizes = [16, 8], strides = [1, 1]} : vector<16x32xf32> to vector<16x8xf32>
    %cst_27 = arith.constant 0.353553385 : f32
    %74 = vector.broadcast %cst_27 : f32 to vector<16x8xf32>
    %75 = arith.mulf %71, %74 : vector<16x8xf32>
    %cst_28 = arith.constant dense<0.000000e+00> : vector<16x16xf32>
    %76 = tpu.matmul %75, %72, %cst_28 {dimension_numbers = #tpu.dot_dimension_numbers<[1], [1], [0], [0], [0, 0, 1, 0], [], []>} : vector<16x8xf32>, vector<16x8xf32>, vector<16x16xf32> -> vector<16x16xf32>
    %77 = arith.addf %76, %46 : vector<16x16xf32>
    %cst_29 = arith.constant dense<0xFF800000> : vector<16xf32>
    %78 = vector.multi_reduction <maximumf>, %77, %cst_29 [1] : vector<16x16xf32> to vector<16xf32>
    %79 = vector.shape_cast %78 : vector<16xf32> to vector<16x1xf32>
    %80 = vector.broadcast %79 : vector<16x1xf32> to vector<16x16xf32>
    %81 = arith.subf %77, %80 : vector<16x16xf32>
    %82 = math.exp %81 : vector<16x16xf32>
    %cst_30 = arith.constant dense<0.000000e+00> : vector<16xf32>
    %83 = vector.multi_reduction <add>, %82, %cst_30 [1] : vector<16x16xf32> to vector<16xf32>
    %84 = vector.shape_cast %83 : vector<16xf32> to vector<16x1xf32>
    %85 = tpu.reciprocal %84 {approx = true} : vector<16x1xf32> -> vector<16x1xf32>
    %86 = vector.broadcast %85 : vector<16x1xf32> to vector<16x16xf32>
    %87 = arith.mulf %82, %86 : vector<16x16xf32>
    %cst_31 = arith.constant dense<0.000000e+00> : vector<16x8xf32>
    %88 = tpu.matmul %87, %73, %cst_31 {dimension_numbers = #tpu.dot_dimension_numbers<[1], [0], [0], [1], [0, 0, 1, 1], [], []>} : vector<16x16xf32>, vector<16x8xf32>, vector<16x8xf32> -> vector<16x8xf32>
    %89 = vector.extract_strided_slice %45 {offsets = [8, 0], sizes = [8, 32], strides = [1, 1]} : vector<32x32xf32> to vector<8x32xf32>
    %cst_32 = arith.constant dense<0.000000e+00> : vector<16x32xf32>
    %90 = tpu.matmul %88, %89, %cst_32 {dimension_numbers = #tpu.dot_dimension_numbers<[1], [0], [0], [1], [0, 0, 1, 1], [], []>} : vector<16x8xf32>, vector<8x32xf32>, vector<16x32xf32> -> vector<16x32xf32>
    %91 = arith.addf %70, %90 : vector<16x32xf32>
    %92 = vector.extract_strided_slice %31 {offsets = [0, 16], sizes = [16, 8], strides = [1, 1]} : vector<16x32xf32> to vector<16x8xf32>
    %93 = vector.extract_strided_slice %37 {offsets = [0, 16], sizes = [16, 8], strides = [1, 1]} : vector<16x32xf32> to vector<16x8xf32>
    %94 = vector.extract_strided_slice %43 {offsets = [0, 16], sizes = [16, 8], strides = [1, 1]} : vector<16x32xf32> to vector<16x8xf32>
    %cst_33 = arith.constant 0.353553385 : f32
    %95 = vector.broadcast %cst_33 : f32 to vector<16x8xf32>
    %96 = arith.mulf %92, %95 : vector<16x8xf32>
    %cst_34 = arith.constant dense<0.000000e+00> : vector<16x16xf32>
    %97 = tpu.matmul %96, %93, %cst_34 {dimension_numbers = #tpu.dot_dimension_numbers<[1], [1], [0], [0], [0, 0, 1, 0], [], []>} : vector<16x8xf32>, vector<16x8xf32>, vector<16x16xf32> -> vector<16x16xf32>
    %98 = arith.addf %97, %46 : vector<16x16xf32>
    %cst_35 = arith.constant dense<0xFF800000> : vector<16xf32>
    %99 = vector.multi_reduction <maximumf>, %98, %cst_35 [1] : vector<16x16xf32> to vector<16xf32>
    %100 = vector.shape_cast %99 : vector<16xf32> to vector<16x1xf32>
    %101 = vector.broadcast %100 : vector<16x1xf32> to vector<16x16xf32>
    %102 = arith.subf %98, %101 : vector<16x16xf32>
    %103 = math.exp %102 : vector<16x16xf32>
    %cst_36 = arith.constant dense<0.000000e+00> : vector<16xf32>
    %104 = vector.multi_reduction <add>, %103, %cst_36 [1] : vector<16x16xf32> to vector<16xf32>
    %105 = vector.shape_cast %104 : vector<16xf32> to vector<16x1xf32>
    %106 = tpu.reciprocal %105 {approx = true} : vector<16x1xf32> -> vector<16x1xf32>
    %107 = vector.broadcast %106 : vector<16x1xf32> to vector<16x16xf32>
    %108 = arith.mulf %103, %107 : vector<16x16xf32>
    %cst_37 = arith.constant dense<0.000000e+00> : vector<16x8xf32>
    %109 = tpu.matmul %108, %94, %cst_37 {dimension_numbers = #tpu.dot_dimension_numbers<[1], [0], [0], [1], [0, 0, 1, 1], [], []>} : vector<16x16xf32>, vector<16x8xf32>, vector<16x8xf32> -> vector<16x8xf32>
    %110 = vector.extract_strided_slice %45 {offsets = [16, 0], sizes = [8, 32], strides = [1, 1]} : vector<32x32xf32> to vector<8x32xf32>
    %cst_38 = arith.constant dense<0.000000e+00> : vector<16x32xf32>
    %111 = tpu.matmul %109, %110, %cst_38 {dimension_numbers = #tpu.dot_dimension_numbers<[1], [0], [0], [1], [0, 0, 1, 1], [], []>} : vector<16x8xf32>, vector<8x32xf32>, vector<16x32xf32> -> vector<16x32xf32>
    %112 = arith.addf %91, %111 : vector<16x32xf32>
    %113 = vector.extract_strided_slice %31 {offsets = [0, 24], sizes = [16, 8], strides = [1, 1]} : vector<16x32xf32> to vector<16x8xf32>
    %114 = vector.extract_strided_slice %37 {offsets = [0, 24], sizes = [16, 8], strides = [1, 1]} : vector<16x32xf32> to vector<16x8xf32>
    %115 = vector.extract_strided_slice %43 {offsets = [0, 24], sizes = [16, 8], strides = [1, 1]} : vector<16x32xf32> to vector<16x8xf32>
    %cst_39 = arith.constant 0.353553385 : f32
    %116 = vector.broadcast %cst_39 : f32 to vector<16x8xf32>
    %117 = arith.mulf %113, %116 : vector<16x8xf32>
    %cst_40 = arith.constant dense<0.000000e+00> : vector<16x16xf32>
    %118 = tpu.matmul %117, %114, %cst_40 {dimension_numbers = #tpu.dot_dimension_numbers<[1], [1], [0], [0], [0, 0, 1, 0], [], []>} : vector<16x8xf32>, vector<16x8xf32>, vector<16x16xf32> -> vector<16x16xf32>
    %119 = arith.addf %118, %46 : vector<16x16xf32>
    %cst_41 = arith.constant dense<0xFF800000> : vector<16xf32>
    %120 = vector.multi_reduction <maximumf>, %119, %cst_41 [1] : vector<16x16xf32> to vector<16xf32>
    %121 = vector.shape_cast %120 : vector<16xf32> to vector<16x1xf32>
    %122 = vector.broadcast %121 : vector<16x1xf32> to vector<16x16xf32>
    %123 = arith.subf %119, %122 : vector<16x16xf32>
    %124 = math.exp %123 : vector<16x16xf32>
    %cst_42 = arith.constant dense<0.000000e+00> : vector<16xf32>
    %125 = vector.multi_reduction <add>, %124, %cst_42 [1] : vector<16x16xf32> to vector<16xf32>
    %126 = vector.shape_cast %125 : vector<16xf32> to vector<16x1xf32>
    %127 = tpu.reciprocal %126 {approx = true} : vector<16x1xf32> -> vector<16x1xf32>
    %128 = vector.broadcast %127 : vector<16x1xf32> to vector<16x16xf32>
    %129 = arith.mulf %124, %128 : vector<16x16xf32>
    %cst_43 = arith.constant dense<0.000000e+00> : vector<16x8xf32>
    %130 = tpu.matmul %129, %115, %cst_43 {dimension_numbers = #tpu.dot_dimension_numbers<[1], [0], [0], [1], [0, 0, 1, 1], [], []>} : vector<16x16xf32>, vector<16x8xf32>, vector<16x8xf32> -> vector<16x8xf32>
    %131 = vector.extract_strided_slice %45 {offsets = [24, 0], sizes = [8, 32], strides = [1, 1]} : vector<32x32xf32> to vector<8x32xf32>
    %cst_44 = arith.constant dense<0.000000e+00> : vector<16x32xf32>
    %132 = tpu.matmul %130, %131, %cst_44 {dimension_numbers = #tpu.dot_dimension_numbers<[1], [0], [0], [1], [0, 0, 1, 1], [], []>} : vector<16x8xf32>, vector<8x32xf32>, vector<16x32xf32> -> vector<16x32xf32>
    %133 = arith.addf %112, %132 : vector<16x32xf32>
    %c0_45 = arith.constant 0 : index
    %c0_46 = arith.constant 0 : index
    %134 = vector.load %arg4[%c0_45, %c0_46] : memref<16x32xf32, #tpu.memory_space<vmem>>, vector<16x32xf32>
    tpu.vector_store %arg4[%c0_45, %c0_46], %133 {strides = array<i32>} : memref<16x32xf32, #tpu.memory_space<vmem>>, vector<16x32xf32>,
    return
  }
}

</mosaic_0001>

<bundles_post_ra>
// kernel: tpu_custom_call.1
= control target key start
LH: loop header
LB: loop body
LE: loop exit
PB: predicated region body
PF: predicated region fallthrough
CT: control target
= control target key end

     0   :  { %9 = vsyncpa [#allocation3], 0  ;;  %s2224_s0 = inlined_call_operand.hbm [shape: f32[16,32], index: 0, kind: input, shape index: {}]   ;;  %s2225_s1 = inlined_call_operand.hbm [shape: f32[16,16], index: 1, kind: input, shape index: {}]   ;;  %s2226_s2 = inlined_call_operand.hbm [shape: f32[4,32,32], index: 2, kind: input, shape index: {}]   ;;  %s2227_s3 = inlined_call_operand.vmem [shape: f32[6,32], index: 3, kind: input, shape index: {}]   ;;  %s2228_s4 = inlined_call_operand.hbm [shape: f32[16,32], index: 4, kind: output, shape index: {}]  }
   0x1   :  { %10 = vsyncpa [#allocation6], 0 }
   0x2   :  { %11 = vsyncpa [#allocation4], 0  ;;  %s1970_s15 = smov [#allocation5]   ;;  %s1971_s17 = smov [#allocation2]  }
   0x3   :  { %s29_s16 = sshll.u32 %s1970_s15, 4  ;;  %s17_s18 = sshll.u32 %s1971_s17, 4  ;;  %s30_s16 = int_to_ptr.vmem [resolvable:$true] %s29_s16  ;;  %s2004_s18 = int_to_ptr.vmem [resolvable:$true] %s17_s18 }
   0x4   :  { %s1876_s21 = scalar_lea.hbm %s2225_s1, 256 }
   0x5   :  { %p1877_p0 = scmp.ne.s32.totalorder %s2225_s1, %s1876_s21  ;;  %p1880_p1 = scmp.lt.u32.totalorder %s1876_s21, %s2225_s1 }
   0x7   :  { %p1882_p2 = pnand %p1880_p1, %p1877_p0 }
   0x9   :  { %1885 = shalt.err (!%p1882_p2)
}
   0xa   :  { %s1886_s26 = scalar_lea.vmem %s30_s16, 256  ;;  %p1891_p4 = scmp.lt.s32.totalorder %s30_s16, %s30_s16 }
   0xb   :  { %p1887_p3 = scmp.ne.s32.totalorder %s30_s16, %s1886_s26  ;;  %p1892_p5 = scmp.lt.s32.totalorder %s1886_s26, %s1886_s26 }
   0xd   :  { %p1893_p6 = por %p1892_p5, %p1891_p4 }
   0xf   :  { %p1894_p7 = pnand %p1893_p6, %p1887_p3 }
  0x11   :  { %1897 = shalt.err (!%p1894_p7)
}
  0x12   :  { %s1972_s27 = smov 128   ;;  %s1973_s28 = smov 8  }
  0x13   :  { %35 = dma.hbm_to_vmem [thread:$0]  %s2225_s1, 256, %s30_s16, [#allocation6], %s1972_s27, %s1972_s27, %s1973_s28  }
  0x14   :  { %s1898_s7 = scalar_lea.hbm %s2224_s0, 256 }
  0x15   :  { %p1899_p8 = scmp.ne.s32.totalorder %s2224_s0, %s1898_s7  ;;  %p1902_p9 = scmp.lt.u32.totalorder %s1898_s7, %s2224_s0 }
  0x17   :  { %p1904_p10 = pnand %p1902_p9, %p1899_p8 }
  0x19   :  { %1907 = shalt.err (!%p1904_p10)
}
  0x1a   :  { %s1908_s12 = scalar_lea.vmem %s2004_s18, 256  ;;  %p1913_p12 = scmp.lt.s32.totalorder %s2004_s18, %s2004_s18 }
  0x1b   :  { %p1909_p11 = scmp.ne.s32.totalorder %s2004_s18, %s1908_s12  ;;  %p1914_p13 = scmp.lt.s32.totalorder %s1908_s12, %s1908_s12 }
  0x1d   :  { %p1915_p0 = por %p1914_p13, %p1913_p12 }
  0x1f   :  { %p1916_p1 = pnand %p1915_p0, %p1909_p11 }
  0x21   :  { %1919 = shalt.err (!%p1916_p1)
}
  0x22   :  { %23 = dma.hbm_to_vmem [thread:$0]  %s2224_s0, 256, %s2004_s18, [#allocation3], %s1972_s27, %s1972_s27, %s1973_s28  }
  0x23   :  { %s1974_s14 = smov [#allocation7]   ;;  %s1920_s19 = scalar_lea.hbm %s2226_s2, 2048 }
  0x24   :  { %s41_s15 = sshll.u32 %s1974_s14, 4  ;;  %p1921_p2 = scmp.ne.s32.totalorder %s2226_s2, %s1920_s19  ;;  %s42_s15 = int_to_ptr.vmem [resolvable:$true] %s41_s15 }
  0x25   :  { %p1924_p3 = scmp.lt.u32.totalorder %s1920_s19, %s2226_s2 }
  0x27   :  { %p1926_p4 = pnand %p1924_p3, %p1921_p2 }
  0x29   :  { %1929 = shalt.err (!%p1926_p4)
}
  0x2a   :  { %s1930_s24 = scalar_lea.vmem %s42_s15, 2048  ;;  %p1935_p6 = scmp.lt.s32.totalorder %s42_s15, %s42_s15 }
  0x2b   :  { %p1931_p5 = scmp.ne.s32.totalorder %s42_s15, %s1930_s24  ;;  %p1936_p7 = scmp.lt.s32.totalorder %s1930_s24, %s1930_s24 }
  0x2d   :  { %p1937_p8 = por %p1936_p7, %p1935_p6 }
  0x2f   :  { %p1938_p9 = pnand %p1937_p8, %p1931_p5 }
  0x31   :  { %1941 = shalt.err (!%p1938_p9)
}
  0x32   :  { %47 = dma.hbm_to_vmem [thread:$0]  %s2226_s2, 2048, %s42_s15, [#allocation6], %s1972_s27, %s1972_s27, %s1973_s28  }
  0x33   :  { %1964 = dma.done.wait [#allocation3], 256  }
  0x34   :  { %1965 = vsyncadd [#allocation3], 4294967040 }
  0x35   :  { %1966 = dma.done.wait [#allocation6], 2304  }
  0x36   :  { %1967 = vsyncadd [#allocation6], 4294964992  ;;  %vm62_vm0 = vcmask 261120   ;;  %v2056_v0 = vld [vmem:[#allocation2] sm:$0xff]  ;;  %v2058_v1 = vld [vmem:[#allocation2 + $0x8] sm:$0xff]  ;;  %v90_v31 = vlaneseq  ;;  %vm374_vm1 = vcmask 64512  }
  0x37   :  { %v63_v2 = vsel %vm62_vm0, %v2056_v0, 0.0  ;;  %v66_v3 = vsel %vm62_vm0, %v2058_v1, 0.0  ;;  %v102_v14 = vld [vmem:[#allocation7] sm:$0xff]  ;;  %v103_v15 = vld [vmem:[#allocation7 + $0x8] sm:$0xff]  ;;  %v104_v19 = vld [vmem:[#allocation7 + $0x10] sm:$0xff]  ;;  %vm462_vm3 = vcmask 130048  }
  0x38   :  { %64 = vadd.xlane.f32.xlu0 %v63_v2  ;;  %v192_v16 = vld [vmem:[#allocation7 + $0x20] sm:$0xff]  ;;  %v1729_v17 = vpack.c.bf16 %v103_v15, %v102_v14  ;;  %v193_v18 = vld [vmem:[#allocation7 + $0x28] sm:$0xff]  ;;  %v105_v20 = vld [vmem:[#allocation7 + $0x18] sm:$0xff]  ;;  %v2068_v35 = vshrl.u32 %v90_v31, 7  ;;  %s1976_s26 = smov 112   ;;  %s1977_s29 = smov 104  }
  0x39   :  { %v1737_v21 = vpack.c.bf16 %v193_v18, %v192_v16  ;;  %v1733_v22 = vpack.c.bf16 %v105_v20, %v104_v19  ;;  %v194_v23 = vld [vmem:[#allocation7 + $0x30] sm:$0xff]  ;;  %v195_v24 = vld [vmem:[#allocation7 + $0x38] sm:$0xff]  ;;  %v276_v26 = vld [vmem:[#allocation7 + $0x40] sm:$0xff]  ;;  %s1978_s30 = smov [#allocation8]  }
  0x3a   :  { %1730 = vmatprep.subr.bf16.mxu0 %v1729_v17  ;;  %v1741_v25 = vpack.c.bf16 %v195_v24, %v194_v23  ;;  %v277_v27 = vld [vmem:[#allocation7 + $0x48] sm:$0xff]  ;;  %v92_v37 = vsub.s32 4, %v2068_v35  ;;  %v2074_v38 = vld [vmem:[%s2227_s3] sm:$0x3f]  ;;  %v98_v39 = vsub.s32 5, %v2068_v35  ;;  %v278_v48 = vld [vmem:[#allocation7 + $0x50] sm:$0xff] }
  0x3b   :  { %1732 = vmatpush3.bf16.msra.mxu0 %v1729_v17  ;;  %1738 = vmatprep.subr.bf16.mxu1 %v1737_v21  ;;  %v1745_v28 = vpack.c.bf16 %v277_v27, %v276_v26  ;;  %v279_v49 = vld [vmem:[#allocation7 + $0x58] sm:$0xff]  ;;  %v198_v53 = vsub.s32 1, %v2068_v35  ;;  %v108_v54 = vsub.s32 0, %v2068_v35  ;;  %v282_v62 = vsub.s32 2, %v2068_v35  ;;  %vm2092_vm2 = vmpackc.low %vm374_vm1, %vm374_vm1  ;;  %v2115_v17 = vld [vmem:[#allocation5] sm:$0xff]  ;;  %s1975_s3 = smov 120  }
  0x3c   :  { %67 = vadd.xlane.f32.xlu0 %v66_v3  ;;  %1740 = vmatpush3.bf16.msra.mxu1 %v1737_v21  ;;  %v93_v40 = vrot.slane %v2074_v38, %v92_v37  ;;  %v99_v43 = vrot.slane %v2074_v38, %v98_v39  ;;  %v1749_v52 = vpack.c.bf16 %v279_v49, %v278_v48  ;;  %v2113_v16 = vld [vmem:[#allocation5 + $0x8] sm:$0xff]  ;;  %s1507_s5 = sshll.u32 %s1978_s30, 4  ;;  %s1508_s5 = int_to_ptr.vmem [resolvable:$true] %s1507_s5 }
  0x3d   :  { %1734 = vmatprep.subr.bf16.mxu0 %v1733_v22  ;;  %1742 = vmatprep.subr.bf16.mxu1 %v1741_v25  ;;  %v199_v55 = vrot.slane %v2074_v38, %v198_v53  ;;  %v109_v56 = vrot.slane %v2074_v38, %v108_v54  ;;  %v360_v54 = vld [vmem:[#allocation7 + $0x60] sm:$0xff]  ;;  %s1942_s6 = scalar_lea.vmem %s1508_s5, 256  ;;  %p1947_p11 = scmp.lt.s32.totalorder %s1508_s5, %s1508_s5 }
  0x3e   :  { %p1943_p10 = scmp.ne.s32.totalorder %s1508_s5, %s1942_s6  ;;  %p1948_p12 = scmp.lt.s32.totalorder %s1942_s6, %s1942_s6 }
  0x3f   :  { %1736 = vmatpush3.bf16.msra.mxu0 %v1733_v22 }
  0x40   :  { %1744 = vmatpush3.bf16.msra.mxu1 %v1741_v25  ;;  %1746 = vmatprep.subr.bf16.mxu0 %v1745_v28  ;;  %p1949_p13 = por %p1948_p12, %p1947_p11 }
  0x42   :  { %p1950_p0 = pnand %p1949_p13, %p1943_p10 }
  0xc5   :  { %v65_v4 = vpop.xlane.xlu0 %64 }
  0xc6   :  { %v70_v5 = vmul.f32 0.03125, %v65_v4 }
  0xc8   :  { %v72_v6 = vsub.f32 %v2056_v0, %v70_v5 }
  0xc9   :  { %v68_v7 = vpop.xlane.xlu0 %67 }
  0xca   :  { %v71_v8 = vmul.f32 0.03125, %v68_v7  ;;  %v74_v9 = vmul.f32 %v72_v6, %v72_v6  ;;  %v283_v7 = vrot.slane %v2074_v38, %v282_v62 }
  0xcc   :  { %v73_v10 = vsub.f32 %v2058_v1, %v71_v8  ;;  %v76_v11 = vsel %vm62_vm0, %v74_v9, 0.0 }
  0xcd   :  { %77 = vadd.xlane.f32.xlu1 %v76_v11 }
  0xce   :  { %v75_v12 = vmul.f32 %v73_v10, %v73_v10 }
  0xd0   :  { %v79_v13 = vsel %vm62_vm0, %v75_v12, 0.0 }
  0xd1   :  { %80 = vadd.xlane.f32.xlu1 %v79_v13 }
 0x15a   :  { %v78_v29 = vpop.xlane.xlu1 %77 }
 0x15b   :  { %v82_v30 = vmul.f32 0.03125, %v78_v29 }
 0x15d   :  { %v84_v32 = vadd.f32 1e-05, %v82_v30 }
 0x15e   :  { %v81_v33 = vpop.xlane.xlu1 %80 }
 0x15f   :  { %1840 = vrsqrt.f32 %v84_v32  ;;  %v83_v34 = vmul.f32 0.03125, %v81_v33 }
 0x161   :  { %v85_v36 = vadd.f32 1e-05, %v83_v34 }
 0x163   :  { %1842 = vrsqrt.f32 %v85_v36 }
 0x169   :  { %v1841_v41 = vpop.eup %1840 }
 0x16a   :  { %v88_v42 = vmul.f32 %v1841_v41, %v72_v6 }
 0x16c   :  { %v94_v44 = vmul.f32 %v93_v40, %v88_v42 }
 0x16d   :  { %v1843_v45 = vpop.eup %1842 }
 0x16e   :  { %v100_v46 = vadd.f32 %v99_v43, %v94_v44  ;;  %v89_v47 = vmul.f32 %v1843_v45, %v73_v10 }
 0x170   :  { %1628 = vmatprep.mubr.msk.f32.mxu0 %vm62_vm0, %v100_v46  ;;  %1639 = vmatprep.mubr.msk.f32.mxu1 %vm62_vm0, %v100_v46  ;;  %v95_v50 = vmul.f32 %v93_v40, %v89_v47 }
 0x172   :  { %v101_v51 = vadd.f32 %v99_v43, %v95_v50 }
 0x174   :  { %1629 = vmatmul.mubr.msk.f32.vlgmr.msra.gmra.mrb[0].mxu0 %vm62_vm0, %v101_v51  ;;  %1640 = vmatmul.mubr.msk.f32.vlgmr.msra.gmra.mrb[0].mxu1 %vm62_vm0, %v101_v51 }
 0x175   :  { %1748 = vmatpush3.bf16.msra.mxu0 %v1745_v28  ;;  %1650 = vmatprep.mubr.msk.f32.mxu0 %vm62_vm0, %v100_v46 }
 0x176   :  { %1750 = vmatprep.subr.bf16.mxu0 %v1749_v52 }
 0x179   :  { %1752 = vmatpush3.bf16.msra.mxu0 %v1749_v52 }
 0x17c   :  { %1651 = vmatmul.mubr.msk.f32.vlgmr.msra.gmra.mrb[2].mxu0 %vm62_vm0, %v101_v51 }
 0x247   :  { %v1630_v57 = vpop.f32.mrb[0].mxu0  ;;  %v1641_v58 = vpop.f32.mrb[0].mxu1 }
 0x248   :  { %v272_v59 = vadd.f32 %v1641_v58, %v199_v55  ;;  %v182_v60 = vpop.f32.mrb[1].mxu0  ;;  %v266_v61 = vpop.f32.mrb[1].mxu1  ;;  %v188_v8 = vadd.f32 %v1630_v57, %v109_v56 }
 0x249   :  { %v183_v63 = vadd.f32 %v182_v60, %v109_v56  ;;  %v267_v2 = vadd.f32 %v266_v61, %v199_v55 }
 0x24a   :  { %v2107_v13 = vmul.f32 0.35355338, %v188_v8 }
 0x24b   :  { %v2096_v4 = vmul.f32 0.35355338, %v183_v63  ;;  %v1753_v5 = vpack.c.bf16 %v272_v59, %v267_v2  ;;  %v2098_v6 = vpack.i.bf16 %v272_v59, %v267_v2 }
 0x24d   :  { %1755 = vmatprep.subr.msk.bf16.mxu1 %vm2092_vm2, %v1753_v5  ;;  %1657 = vmatprep.mubr.msk.f32.mxu1 %vm374_vm1, %v2096_v4 }
 0x24e   :  { %1758 = vmatpush3.bf16.xpose.msk.msra.mxu1 %vm2092_vm2, %v1753_v5 }
 0x24f   :  { %v1652_v9 = vpop.f32.mrb[2].mxu0  ;;  %1667 = vmatprep.subr.mxu1 %v360_v54 }
 0x250   :  { %v356_v10 = vadd.f32 %v1652_v9, %v283_v7  ;;  %v350_v11 = vpop.f32.mrb[3].mxu0 }
 0x251   :  { %v351_v12 = vadd.f32 %v350_v11, %v283_v7 }
 0x253   :  { %v1759_v14 = vpack.c.bf16 %v356_v10, %v351_v12  ;;  %v2109_v15 = vpack.i.bf16 %v356_v10, %v351_v12 }
 0x255   :  { %1760 = vmatprep.subr.bf16.mxu0 %v1759_v14  ;;  %1658 = vmatmul.mubr.msk.f32.vlgmr.msra.gmra.mrb[2].mxu1 %vm374_vm1, %v2107_v13 }
 0x256   :  { %1762 = vmatpush3.bf16.msra.mxu0 %v1759_v14  ;;  %1668 = vmatpush3.msra.mxu1 %v360_v54  ;;  %v361_v54 = vld [vmem:[#allocation7 + $0x68] sm:$0xff] }
 0x328   :  { %v1659_v18 = vpop.f32.mrb[2].mxu1 }
 0x329   :  { %v459_v19 = vadd.f32 %v1659_v18, %v2113_v16  ;;  %v453_v20 = vpop.f32.mrb[3].mxu1 }
 0x32a   :  { %v454_v21 = vadd.f32 %v453_v20, %v2115_v17 }
 0x32b   :  { %v466_v22 = vsel %vm462_vm3, %v459_v19, -inf }
 0x32c   :  { %467 = vmax.xlane.f32.xlu1 %v466_v22  ;;  %v463_v23 = vsel %vm462_vm3, %v454_v21, -inf }
 0x32d   :  { %464 = vmax.xlane.f32.xlu0 %v463_v23 }
 0x3b9   :  { %v468_v24 = vpop.xlane.xlu1 %467 }
 0x3ba   :  { %v470_v25 = vsub.f32 %v459_v19, %v468_v24  ;;  %v465_v26 = vpop.xlane.xlu0 %464 }
 0x3bb   :  { %v469_v27 = vsub.f32 %v454_v21, %v465_v26 }
 0x3bc   :  { %v473_v28 = vmul.f32 1.442695, %v470_v25 }
 0x3bd   :  { %v471_v29 = vmul.f32 1.442695, %v469_v27 }
 0x3be   :  { %1844 = vpow2.f32 %v473_v28 }
 0x3bf   :  { %1846 = vpow2.f32 %v471_v29 }
 0x3c8   :  { %v1845_v30 = vpop.eup %1844 }
 0x3c9   :  { %v1847_v31 = vpop.eup %1846  ;;  %v478_v32 = vsel %vm462_vm3, %v1845_v30, 0.0 }
 0x3ca   :  { %479 = vadd.xlane.f32.xlu1 %v478_v32  ;;  %v475_v33 = vsel %vm462_vm3, %v1847_v31, 0.0 }
 0x3cb   :  { %476 = vadd.xlane.f32.xlu0 %v475_v33 }
 0x3db   :  { %649 = vrot.lane.b32.xlu1 %v2096_v4, %s1975_s3 }
 0x3df   :  { %651 = vrot.lane.b32.xlu1 %v2107_v13, %s1975_s3 }
 0x3e1   :  { %1811 = vrot.lane.b32.xlu0 %v2098_v6, %s1975_s3 }
 0x3e3   :  { %1816 = vrot.lane.b32.xlu1 %v2098_v6, %s1976_s26 }
 0x3e5   :  { %934 = vrot.lane.b32.xlu0 %v2096_v4, %s1976_s26 }
 0x3e7   :  { %936 = vrot.lane.b32.xlu1 %v2107_v13, %s1976_s26 }
 0x457   :  { %v480_v34 = vpop.xlane.xlu1 %479 }
 0x458   :  { %1848 = vrcp.f32 %v480_v34  ;;  %v477_v36 = vpop.xlane.xlu0 %476 }
 0x459   :  { %1850 = vrcp.f32 %v477_v36 }
 0x45b   :  { %v650_v37 = vpop.permute.xlu1 %649 }
 0x45c   :  { %v1812_v39 = vpop.permute.xlu0 %1811 }
 0x45d   :  { %v1814_v40 = vunpack.i.h.bf16 %v1812_v39  ;;  %v1813_v41 = vunpack.i.l.bf16 %v1812_v39 }
 0x45f   :  { %v1763_v42 = vpack.c.bf16 %v1814_v40, %v1813_v41  ;;  %v652_v43 = vpop.permute.xlu1 %651 }
 0x460   :  { %v935_v52 = vpop.permute.xlu0 %934 }
 0x461   :  { %1765 = vmatprep.subr.msk.bf16.mxu0 %vm2092_vm2, %v1763_v42 }
 0x462   :  { %v1849_v44 = vpop.eup %1848 }
 0x463   :  { %v1851_v45 = vpop.eup %1850  ;;  %v1817_v46 = vpop.permute.xlu1 %1816  ;;  %v484_v50 = vmul.f32 %v1849_v44, %v1845_v30 }
 0x464   :  { %v1819_v47 = vunpack.i.h.bf16 %v1817_v46  ;;  %v1818_v48 = vunpack.i.l.bf16 %v1817_v46  ;;  %v483_v49 = vmul.f32 %v1851_v45, %v1847_v31 }
 0x466   :  { %v1773_v51 = vpack.c.bf16 %v1819_v47, %v1818_v48  ;;  %1664 = vmatprep.mubr.msk.f32.mxu0 %vm462_vm3, %v483_v49 }
 0x467   :  { %1665 = vmatmul.mubr.msk.f32.vlgmr.msra.gmra.mrb[4].mxu0 %vm462_vm3, %v484_v50  ;;  %v937_v53 = vpop.permute.xlu1 %936 }
 0x468   :  { %1768 = vmatpush3.bf16.xpose.msk.msra.mxu0 %vm2092_vm2, %v1763_v42  ;;  %1676 = vmatprep.mubr.msk.f32.mxu0 %vm374_vm1, %v650_v37 }
 0x469   :  { %1775 = vmatprep.subr.msk.bf16.mxu0 %vm2092_vm2, %v1773_v51 }
 0x46f   :  { %1677 = vmatmul.mubr.msk.f32.vlgmr.msra.gmra.mrb[6].mxu0 %vm374_vm1, %v652_v43 }
 0x470   :  { %1778 = vmatpush3.bf16.xpose.msk.msra.mxu0 %vm2092_vm2, %v1773_v51  ;;  %1695 = vmatprep.mubr.msk.f32.mxu0 %vm374_vm1, %v935_v52 }
 0x477   :  { %1696 = vmatmul.mubr.msk.f32.vlgmr.msra.gmra.mrb[8].mxu0 %vm374_vm1, %v937_v53 }
 0x53a   :  { %v1666_v55 = vpop.f32.mrb[4].mxu0 }
 0x53b   :  { %v557_v56 = vpop.f32.mrb[5].mxu0 }
 0x53c   :  { %1669 = vmatprep.mubr.msk.f32.mxu1 %vm374_vm1, %v557_v56 }
 0x53d   :  { %1670 = vmatmul.mubr.msk.f32.vlgmr.msra.gmra.mrb[4].mxu1 %vm374_vm1, %v1666_v55 }
 0x542   :  { %v1678_v57 = vpop.f32.mrb[6].mxu0 }
 0x543   :  { %v737_v58 = vadd.f32 %v1678_v57, %v2113_v16  ;;  %v731_v59 = vpop.f32.mrb[7].mxu0 }
 0x544   :  { %v732_v60 = vadd.f32 %v731_v59, %v2115_v17 }
 0x545   :  { %v743_v61 = vsel %vm462_vm3, %v737_v58, -inf }
 0x546   :  { %744 = vmax.xlane.f32.xlu1 %v743_v61  ;;  %v740_v62 = vsel %vm462_vm3, %v732_v60, -inf }
 0x547   :  { %741 = vmax.xlane.f32.xlu0 %v740_v62 }
 0x54a   :  { %v1697_v63 = vpop.f32.mrb[8].mxu0 }
 0x54b   :  { %v1016_v2 = vpop.f32.mrb[9].mxu0  ;;  %v1022_v5 = vadd.f32 %v1697_v63, %v2113_v16 }
 0x54c   :  { %v1017_v3 = vadd.f32 %v1016_v2, %v2115_v17 }
 0x54d   :  { %v1028_v7 = vsel %vm462_vm3, %v1022_v5, -inf }
 0x54e   :  { %v1025_v28 = vsel %vm462_vm3, %v1017_v3, -inf }
 0x557   :  { %1826 = vrot.lane.b32.xlu1 %v2098_v6, %s1977_s29 }
 0x55b   :  { %1217 = vrot.lane.b32.xlu1 %v2096_v4, %s1977_s29 }
 0x55f   :  { %1219 = vrot.lane.b32.xlu1 %v2107_v13, %s1977_s29 }
 0x583   :  { %1029 = vmax.xlane.f32.xlu1 %v1028_v7 }
 0x5d3   :  { %v745_v8 = vpop.xlane.xlu1 %744 }
 0x5d4   :  { %v747_v9 = vsub.f32 %v737_v58, %v745_v8  ;;  %v742_v10 = vpop.xlane.xlu0 %741 }
 0x5d5   :  { %v746_v11 = vsub.f32 %v732_v60, %v742_v10 }
 0x5d6   :  { %v750_v12 = vmul.f32 1.442695, %v747_v9 }
 0x5d7   :  { %v748_v14 = vmul.f32 1.442695, %v746_v11  ;;  %v1827_v18 = vpop.permute.xlu1 %1826 }
 0x5d8   :  { %1852 = vpow2.f32 %v750_v12  ;;  %v1829_v6 = vunpack.i.h.bf16 %v1827_v18  ;;  %v1828_v19 = vunpack.i.l.bf16 %v1827_v18 }
 0x5d9   :  { %1854 = vpow2.f32 %v748_v14 }
 0x5da   :  { %v1783_v4 = vpack.c.bf16 %v1829_v6, %v1828_v19  ;;  %v362_v19 = vld [vmem:[#allocation7 + $0x70] sm:$0xff] }
 0x5db   :  { %v1218_v20 = vpop.permute.xlu1 %1217 }
 0x5dc   :  { %1785 = vmatprep.subr.msk.bf16.mxu0 %vm2092_vm2, %v1783_v4  ;;  %1714 = vmatprep.mubr.msk.f32.mxu0 %vm374_vm1, %v1218_v20 }
 0x5dd   :  { %1788 = vmatpush3.bf16.xpose.msk.msra.mxu0 %vm2092_vm2, %v1783_v4 }
 0x5df   :  { %v1220_v21 = vpop.permute.xlu1 %1219 }
 0x5e2   :  { %v1853_v13 = vpop.eup %1852 }
 0x5e3   :  { %v755_v22 = vsel %vm462_vm3, %v1853_v13, 0.0  ;;  %v1855_v23 = vpop.eup %1854 }
 0x5e4   :  { %1715 = vmatmul.mubr.msk.f32.vlgmr.msra.gmra.mrb[10].mxu0 %vm374_vm1, %v1220_v21  ;;  %756 = vadd.xlane.f32.xlu0 %v755_v22  ;;  %v752_v24 = vsel %vm462_vm3, %v1855_v23, 0.0 }
 0x5e8   :  { %753 = vadd.xlane.f32.xlu0 %v752_v24 }
 0x5fe   :  { %1821 = vrot.lane.b32.xlu0 %v2109_v15, %s1975_s3 }
 0x610   :  { %v1030_v25 = vpop.xlane.xlu1 %1029 }
 0x611   :  { %v1032_v26 = vsub.f32 %v1022_v5, %v1030_v25 }
 0x613   :  { %v1035_v27 = vmul.f32 1.442695, %v1032_v26 }
 0x615   :  { %1856 = vpow2.f32 %v1035_v27 }
 0x61d   :  { %1026 = vmax.xlane.f32.xlu0 %v1025_v28 }
 0x61f   :  { %v2175_v29 = vpop.eup %1856 }
 0x620   :  { %v1040_v30 = vsel %vm462_vm3, %v2175_v29, 0.0 }
 0x621   :  { %1041 = vadd.xlane.f32.xlu0 %v1040_v30 }
 0x671   :  { %v757_v31 = vpop.xlane.xlu0 %756 }
 0x672   :  { %1858 = vrcp.f32 %v757_v31  ;;  %v368_v31 = vsub.s32 3, %v2068_v35 }
 0x675   :  { %v754_v32 = vpop.xlane.xlu0 %753 }
 0x676   :  { %1860 = vrcp.f32 %v754_v32  ;;  %v369_v32 = vrot.slane %v2074_v38, %v368_v31 }
 0x679   :  { %v1822_v33 = vpop.permute.xlu0 %1821 }
 0x67a   :  { %v1824_v34 = vunpack.i.h.bf16 %v1822_v33  ;;  %v1823_v36 = vunpack.i.l.bf16 %v1822_v33  ;;  %v371_v33 = vadd.f32 %v369_v32, %v2058_v1 }
 0x67c   :  { %v1769_v37 = vpack.c.bf16 %v1824_v34, %v1823_v36  ;;  %v1859_v39 = vpop.eup %1858  ;;  %v370_v34 = vadd.f32 %v369_v32, %v2056_v0 }
 0x67d   :  { %v761_v42 = vmul.f32 %v1859_v39, %v1853_v13 }
 0x67e   :  { %1770 = vmatprep.subr.bf16.mxu1 %v1769_v37 }
 0x67f   :  { %1772 = vmatpush3.bf16.msra.mxu1 %v1769_v37 }
 0x680   :  { %v1861_v40 = vpop.eup %1860  ;;  %1686 = vmatprep.subr.mxu1 %v361_v54 }
 0x681   :  { %v760_v41 = vmul.f32 %v1861_v40, %v1855_v23 }
 0x683   :  { %1683 = vmatprep.mubr.msk.f32.mxu1 %vm462_vm3, %v760_v41 }
 0x684   :  { %1684 = vmatmul.mubr.msk.f32.vlgmr.msra.gmra.mrb[6].mxu1 %vm462_vm3, %v761_v42 }
 0x685   :  { %1687 = vmatpush3.msra.mxu1 %v361_v54 }
 0x6aa   :  { %v1027_v43 = vpop.xlane.xlu0 %1026 }
 0x6ab   :  { %v1031_v44 = vsub.f32 %v1017_v3, %v1027_v43 }
 0x6ad   :  { %v1033_v45 = vmul.f32 1.442695, %v1031_v44 }
 0x6ae   :  { %v1042_v55 = vpop.xlane.xlu0 %1041 }
 0x6af   :  { %1862 = vpow2.f32 %v1033_v45 }
 0x6b7   :  { %v1716_v46 = vpop.f32.mrb[10].mxu0 }
 0x6b8   :  { %v1299_v47 = vpop.f32.mrb[11].mxu0  ;;  %v1305_v51 = vadd.f32 %v1716_v46, %v2113_v16 }
 0x6b9   :  { %v1863_v48 = vpop.eup %1862  ;;  %v1300_v49 = vadd.f32 %v1299_v47, %v2115_v17 }
 0x6ba   :  { %v1037_v50 = vsel %vm462_vm3, %v1863_v48, 0.0  ;;  %v1311_v53 = vsel %vm462_vm3, %v1305_v51, -inf }
 0x6bb   :  { %1038 = vadd.xlane.f32.xlu0 %v1037_v50  ;;  %v1308_v52 = vsel %vm462_vm3, %v1300_v49, -inf }
 0x6bc   :  { %1309 = vmax.xlane.f32.xlu1 %v1308_v52 }
 0x6c0   :  { %1312 = vmax.xlane.f32.xlu1 %v1311_v53 }
 0x6d1   :  { %1831 = vrot.lane.b32.xlu0 %v2109_v15, %s1976_s26 }
 0x748   :  { %v1039_v56 = vpop.xlane.xlu0 %1038 }
 0x749   :  { %v1310_v17 = vpop.xlane.xlu1 %1309  ;;  %1864 = vrcp.f32 %v1039_v56 }
 0x74a   :  { %v1314_v57 = vsub.f32 %v1300_v49, %v1310_v17  ;;  %1866 = vrcp.f32 %v1042_v55 }
 0x74c   :  { %v1832_v58 = vpop.permute.xlu0 %1831  ;;  %v1316_v63 = vmul.f32 1.442695, %v1314_v57 }
 0x74d   :  { %v1834_v16 = vunpack.i.h.bf16 %v1832_v58  ;;  %v1833_v59 = vunpack.i.l.bf16 %v1832_v58  ;;  %v1313_v60 = vpop.xlane.xlu1 %1312 }
 0x74e   :  { %v1315_v61 = vsub.f32 %v1305_v51, %v1313_v60 }
 0x74f   :  { %v1779_v62 = vpack.c.bf16 %v1834_v16, %v1833_v59 }
 0x750   :  { %v1318_v2 = vmul.f32 1.442695, %v1315_v61 }
 0x751   :  { %1780 = vmatprep.subr.bf16.mxu1 %v1779_v62 }
 0x752   :  { %1868 = vpow2.f32 %v1318_v2 }
 0x753   :  { %1870 = vpow2.f32 %v1316_v63  ;;  %v1865_v5 = vpop.eup %1864 }
 0x754   :  { %v1867_v9 = vpop.eup %1866  ;;  %v1045_v10 = vmul.f32 %v1865_v5, %v1863_v48 }
 0x755   :  { %v1046_v12 = vmul.f32 %v1867_v9, %v2175_v29 }
 0x757   :  { %v1685_v7 = vpop.f32.mrb[6].mxu1 }
 0x758   :  { %v842_v8 = vpop.f32.mrb[7].mxu1 }
 0x759   :  { %1688 = vmatprep.mubr.msk.f32.mxu1 %vm374_vm1, %v842_v8 }
 0x75a   :  { %1689 = vmatmul.mubr.msk.f32.vlgmr.msra.gmra.mrb[4].mxu1 %vm374_vm1, %v1685_v7 }
 0x75b   :  { %1782 = vmatpush3.bf16.msra.mxu1 %v1779_v62  ;;  %1702 = vmatprep.mubr.msk.f32.mxu1 %vm462_vm3, %v1045_v10 }
 0x75c   :  { %v1869_v11 = vpop.eup %1868  ;;  %1705 = vmatprep.subr.mxu1 %v362_v19 }
 0x75d   :  { %v1323_v14 = vsel %vm462_vm3, %v1869_v11, 0.0  ;;  %v1871_v18 = vpop.eup %1870 }
 0x75e   :  { %1324 = vadd.xlane.f32.xlu1 %v1323_v14  ;;  %1703 = vmatmul.mubr.msk.f32.vlgmr.msra.gmra.mrb[8].mxu1 %vm462_vm3, %v1046_v12  ;;  %v1320_v6 = vsel %vm462_vm3, %v1871_v18, 0.0 }
 0x75f   :  { %1706 = vmatpush3.msra.mxu1 %v362_v19 }
 0x762   :  { %1321 = vadd.xlane.f32.xlu1 %v1320_v6 }
 0x773   :  { %1836 = vrot.lane.b32.xlu1 %v2109_v15, %s1977_s29  ;;  %v363_v15 = vld [vmem:[#allocation7 + $0x78] sm:$0xff] }
 0x7eb   :  { %v1325_v4 = vpop.xlane.xlu1 %1324 }
 0x7ef   :  { %v1322_v20 = vpop.xlane.xlu1 %1321 }
 0x7f0   :  { %1872 = vrcp.f32 %v1322_v20 }
 0x7f1   :  { %1874 = vrcp.f32 %v1325_v4 }
 0x7f3   :  { %v1837_v13 = vpop.permute.xlu1 %1836 }
 0x7f4   :  { %v1839_v21 = vunpack.i.h.bf16 %v1837_v13  ;;  %v1838_v22 = vunpack.i.l.bf16 %v1837_v13 }
 0x7f6   :  { %v1789_v23 = vpack.c.bf16 %v1839_v21, %v1838_v22 }
 0x7f8   :  { %1790 = vmatprep.subr.bf16.mxu1 %v1789_v23 }
 0x7fa   :  { %v1873_v24 = vpop.eup %1872 }
 0x7fb   :  { %v1875_v27 = vpop.eup %1874  ;;  %v1328_v3 = vmul.f32 %v1873_v24, %v1871_v18 }
 0x7fc   :  { %v1329_v28 = vmul.f32 %v1875_v27, %v1869_v11 }
 0x831   :  { %v1704_v25 = vpop.f32.mrb[8].mxu1 }
 0x832   :  { %v1125_v26 = vpop.f32.mrb[9].mxu1 }
 0x833   :  { %1707 = vmatprep.mubr.msk.f32.mxu1 %vm374_vm1, %v1125_v26 }
 0x834   :  { %1708 = vmatmul.mubr.msk.f32.vlgmr.msra.gmra.mrb[4].mxu1 %vm374_vm1, %v1704_v25 }
 0x835   :  { %1792 = vmatpush3.bf16.msra.mxu1 %v1789_v23  ;;  %1721 = vmatprep.mubr.msk.f32.mxu1 %vm462_vm3, %v1328_v3 }
 0x836   :  { %1724 = vmatprep.subr.mxu1 %v363_v15 }
 0x838   :  { %1722 = vmatmul.mubr.msk.f32.vlgmr.msra.gmra.mrb[10].mxu1 %vm462_vm3, %v1329_v28 }
 0x839   :  { %1725 = vmatpush3.msra.mxu1 %v363_v15 }
 0x90b   :  { %v1723_v29 = vpop.f32.mrb[10].mxu1 }
 0x90c   :  { %v1408_v30 = vpop.f32.mrb[11].mxu1 }
 0x90d   :  { %1726 = vmatprep.mubr.msk.f32.mxu1 %vm374_vm1, %v1408_v30 }
 0x90e   :  { %1727 = vmatmul.mubr.msk.f32.vlgmr.msra.gmra.mrb[4].mxu1 %vm374_vm1, %v1723_v29 }
 0x9e1   :  { %v1728_v36 = vpop.f32.mrb[4].mxu1 }
 0x9e2   :  { %v1793_v37 = vadd.f32 %v1728_v36, %v371_v33  ;;  %v1489_v39 = vpop.f32.mrb[5].mxu1 }
 0x9e3   :  { %v1794_v40 = vadd.f32 %v1489_v39, %v370_v34 }
 0x9e4   :  { %1501 = vst.msk [vmem:[#allocation8 + $0x8] sm:$0xff] %vm62_vm0, %v1793_v37 }
 0x9e5   :  { %1500 = vst.msk [vmem:[#allocation8] sm:$0xff] %vm62_vm0, %v1794_v40 }
 0x9e6   :  { %1953 = shalt.err (!%p1950_p0)
}
 0x9e7   :  { %s1954_s9 = scalar_lea.hbm %s2228_s4, 256 }
 0x9e8   :  { %p1955_p1 = scmp.ne.s32.totalorder %s2228_s4, %s1954_s9  ;;  %p1958_p2 = scmp.lt.u32.totalorder %s1954_s9, %s2228_s4 }
 0x9ea   :  { %p1960_p3 = pnand %p1958_p2, %p1955_p1 }
 0x9ec   :  { %1963 = shalt.err (!%p1960_p3)
}
 0x9ed   :  { %1513 = dma.vmem_to_hbm [thread:$0]  %s1508_s5, 256, %s2228_s4, [#allocation4], %s1972_s27, %s1972_s27, %s1973_s28  }
 0x9ee   :  { %1968 = dma.done.wait [#allocation4], 256  }
 0x9ef   :  { %1969 = vsyncadd [#allocation4], 4294967040 }
 0x9f0   :  { %1517 = vsyncpa [#allocation3], 1 }
 0x9f1   :  { %1518 = vsyncpa [#allocation6], 1 }
 0x9f2   :  { %1519 = vsyncpa [#allocation4], 1 }

</bundles_post_ra>
